<compile_context>
chip_gen: v5e
topology: v5e:2x2
jax: 0.10.0
libtpu: 0.0.40
codegen_flags: <defaults>
</compile_context>

<pallas_src>
import jax
import jax.numpy as jnp
from jax.experimental import pallas as pl
from jax.experimental.pallas import tpu as pltpu


def _round_up(v, m):
    return ((v + m - 1) // m) * m


def _vmem_limit_bytes():
    # Raise the scoped-VMEM budget above the 16/32 MiB defaults, leaving ~8 MiB
    # of headroom below physical capacity (v5e/v6e -> 100 MiB, v7x -> 56 MiB).
    try:
        cap = int(getattr(pltpu.get_tpu_info(), "vmem_capacity_bytes", 64 << 20))
    except Exception:
        cap = 64 << 20
    return int(max(min(cap - (8 << 20), 100 << 20), 32 << 20))


# ---------------------------------------------------------------------------
# Fused kernel: step 0 DMAs adj->gen / x->h and builds the generalized
# Laplacian in place; every grid step runs one GraphConvolution; the last step
# runs pool / fc / log_softmax.
# ---------------------------------------------------------------------------
def _make_fused_kernel(num_classes):
    def kernel(s_ref, adj_hbm, x_hbm, dp_ref, dq_ref, dr_ref,
               w_ref, b_ref, oh_ref, fcw_ref, fcb_ref,
               out_ref, gen_ref, h_ref, dma_sem):
        layer = pl.program_id(0)
        last = pl.num_programs(0) - 1

        # ---- step 0: DMA adj / x once, build Laplacian in place (no diag
        #      matmuls, no eye temporaries, no in-kernel transcendentals). ----
        @pl.when(layer == 0)
        def _init():
            cp_a = pltpu.make_async_copy(adj_hbm, gen_ref, dma_sem.at[0])
            cp_x = pltpu.make_async_copy(x_hbm, h_ref, dma_sem.at[1])
            cp_a.start()
            cp_x.start()
            cp_a.wait()
            cp_x.wait()

            c1, c2, c3, d1 = s_ref[3], s_ref[4], s_ref[5], s_ref[6]
            n = gen_ref.shape[0]
            row = jax.lax.broadcasted_iota(jnp.int32, (n, n), 0)
            col = jax.lax.broadcasted_iota(jnp.int32, (n, n), 1)
            is_diag = row == col

            adj = gen_ref[...].astype(jnp.float32)
            temp = jnp.where(is_diag, adj + d1, adj)            # adj + d1*I
            # diag(d^q) @ temp @ diag(d^r) == d^q[:,None] * temp * d^r[None,:]
            # (d^p, d^q, d^r are O(N) vectors precomputed in the wrapper).
            off = -c2 * (dq_ref[...] * temp * dr_ref[...])
            gen = jnp.where(is_diag, off + c3 * dp_ref[...] + c1, off)
            gen_ref[...] = gen.astype(gen_ref.dtype)

        # ---- GraphConvolution layer `layer`: h = relu(gen @ (h @ W) + b) ----
        w = w_ref[0]                                            # [Fp, Fp] bf16
        b = b_ref[0]                                            # [1, Fp]  f32
        support = jnp.dot(h_ref[...], w, preferred_element_type=jnp.float32)
        out = jnp.dot(gen_ref[...], support.astype(gen_ref.dtype),
                      preferred_element_type=jnp.float32) + b
        # TODO(synk): F.dropout(p=0.5) is identity in eval mode; training-mode
        # RNG mask not implemented.
        h_ref[...] = jnp.maximum(out, 0.0).astype(h_ref.dtype)

        # ---- last step: global_add_pool + fc + log_softmax ----
        @pl.when(layer == last)
        def _epilogue():
            pooled = jnp.dot(oh_ref[...], h_ref[...],
                             preferred_element_type=jnp.float32)     # [G, Fp]
            logits = jnp.dot(pooled.astype(fcw_ref.dtype), fcw_ref[...],
                             preferred_element_type=jnp.float32) + fcb_ref[...]
            ccol = jax.lax.broadcasted_iota(jnp.int32, logits.shape, 1)
            logits = jnp.where(ccol < num_classes, logits, -1e30)   # mask pad classes
            m = jnp.max(logits, axis=-1, keepdims=True)
            z = logits - m
            lse = jnp.log(jnp.sum(jnp.exp(z), axis=-1, keepdims=True))
            out_ref[...] = z - lse

    return kernel


# ---------------------------------------------------------------------------
# Wrapper: padding / stacking plumbing + single pallas_call.
# ---------------------------------------------------------------------------
def gcn_graph_classification_forward(x, adj, batch, params, *, gen_f32=False):
    N = x.shape[0]
    conv = params["conv_layers"]
    num_layers = len(conv)
    num_graphs = params["num_graphs"]
    in_dim = conv[0][0].shape[0]
    hidden = conv[0][0].shape[1]
    out_dim = params["fc_w"].shape[1]

    # Lane-dense padding.  round-to-128 already yields 256 when the real
    # hidden dim exceeds 128 (fills the v6e/v7x 256-wide MXU); padding further
    # would only add zero FLOPs.
    Fp = _round_up(max(in_dim, hidden), 128)    # padded feature width
    Cp = _round_up(out_dim, 128)                # padded class width

    scalars = params["scalars"].astype(jnp.float32)
    p, q, r, c1, c2, c3, d1 = (scalars[i] for i in range(7))

    adj_f32 = adj.astype(jnp.float32)
    # O(N) prep hoisted out of the kernel's step-0 critical path: row sums of
    # (adj + d1*I) in f32 (bf16 adj never feeds the negative powers) and their
    # p/q/r powers as tiny column / row vectors.
    # TODO(synk): like the PyTorch reference, assumes row sums > 0 when p/q/r
    # are negative (no clamp is applied).
    diags = jnp.sum(adj_f32, axis=1) + d1                        # [N]
    dp_col = jnp.power(diags, p).reshape(N, 1)
    dq_col = jnp.power(diags, q).reshape(N, 1)
    dr_row = jnp.power(diags, r).reshape(1, N)

    gen_dtype = jnp.float32 if gen_f32 else jnp.bfloat16
    adj_in = adj_f32.astype(gen_dtype)           # DMA'd once into gen scratch

    # Pad node features to [N, Fp] in bf16 (DMA'd once into h scratch).
    x_pad = (jnp.zeros((N, Fp), jnp.float32)
             .at[:, :in_dim].set(x.astype(jnp.float32))
             .astype(jnp.bfloat16))

    # Stack per-layer weights/biases (zero-padded) so one grid step = one layer.
    w_stack = jnp.zeros((num_layers, Fp, Fp), jnp.float32)
    b_stack = jnp.zeros((num_layers, 1, Fp), jnp.float32)
    for i, (w, b) in enumerate(conv):
        w_stack = w_stack.at[i, : w.shape[0], : w.shape[1]].set(w)
        b_stack = b_stack.at[i, :, : b.shape[-1]].set(b.reshape(1, -1))
    w_stack = w_stack.astype(jnp.bfloat16)

    # global_add_pool as one-hot matmul (consumed on-chip in the epilogue).
    onehot = (jnp.arange(num_graphs)[:, None] == batch[None, :]).astype(jnp.bfloat16)

    fcw_pad = (jnp.zeros((Fp, Cp), jnp.float32)
               .at[: params["fc_w"].shape[0], :out_dim].set(params["fc_w"])
               .astype(jnp.bfloat16))
    fcb_pad = jnp.zeros((1, Cp), jnp.float32).at[:, :out_dim].set(
        params["fc_b"].reshape(1, -1))

    kernel = _make_fused_kernel(num_classes=out_dim)

    out_pad = pl.pallas_call(
        kernel,
        out_shape=jax.ShapeDtypeStruct((num_graphs, Cp), jnp.float32),
        grid=(num_layers,),
        in_specs=[
            pl.BlockSpec(memory_space=pltpu.MemorySpace.SMEM),   # p,q,r,c1,c2,c3,d1
            pl.BlockSpec(memory_space=pl.ANY),                   # adj (HBM, DMA'd at step 0)
            pl.BlockSpec(memory_space=pl.ANY),                   # x   (HBM, DMA'd at step 0)
            pl.BlockSpec((N, 1), lambda l: (0, 0)),              # d^p column
            pl.BlockSpec((N, 1), lambda l: (0, 0)),              # d^q column
            pl.BlockSpec((1, N), lambda l: (0, 0)),              # d^r row
            pl.BlockSpec((1, Fp, Fp), lambda l: (l, 0, 0)),      # W of layer l (streamed)
            pl.BlockSpec((1, 1, Fp), lambda l: (l, 0, 0)),       # b of layer l (streamed)
            pl.BlockSpec((num_graphs, N), lambda l: (0, 0)),     # onehot (resident, tiny)
            pl.BlockSpec((Fp, Cp), lambda l: (0, 0)),            # fc W (resident)
            pl.BlockSpec((1, Cp), lambda l: (0, 0)),             # fc b (resident)
        ],
        out_specs=pl.BlockSpec((num_graphs, Cp), lambda l: (0, 0)),
        scratch_shapes=[
            pltpu.VMEM((N, N), gen_dtype),       # generalized Laplacian (in-place from adj)
            pltpu.VMEM((N, Fp), jnp.bfloat16),   # node features h
            pltpu.SemaphoreType.DMA((2,)),       # adj / x one-time DMAs
        ],
        compiler_params=pltpu.CompilerParams(
            dimension_semantics=("arbitrary",),   # layer axis is sequential
            vmem_limit_bytes=_vmem_limit_bytes()),
    )(scalars, adj_in, x_pad, dp_col, dq_col, dr_row,
      w_stack, b_stack, onehot, fcw_pad, fcb_pad)

    return out_pad[:, :out_dim]


# ---------------------------------------------------------------------------
# Pure-JAX reference (f32) for a correctness check.
# ---------------------------------------------------------------------------
def reference_forward(x, adj, batch, params):
    s = params["scalars"]
    p, q, r, c1, c2, c3, d1 = (s[i] for i in range(7))
    n = adj.shape[0]
    eye = jnp.eye(n, dtype=jnp.float32)
    temp = adj + d1 * eye
    diags = temp.sum(1)
    gen = (c3 * jnp.diag(diags ** p)
           - c2 * (jnp.diag(diags ** q) @ temp @ jnp.diag(diags ** r))
           + c1 * eye)
    h = x
    for w, b in params["conv_layers"]:
        h = jax.nn.relu(gen @ (h @ w) + b)
    onehot = (jnp.arange(params["num_graphs"])[:, None] == batch[None, :]).astype(jnp.float32)
    pooled = onehot @ h
    logits = pooled @ params["fc_w"] + params["fc_b"]
    return jax.nn.log_softmax(logits, axis=-1)


def xavier_uniform(key, shape):
    fan_in, fan_out = shape[0], shape[1]
    limit = (6.0 / (fan_in + fan_out)) ** 0.5
    return jax.random.uniform(key, shape, jnp.float32, -limit, limit)


if __name__ == "__main__":
    N, input_dim, hidden_dim, output_dim = 16, 8, 32, 4
    num_layers, num_graphs = 2, 2

    key = jax.random.PRNGKey(0)
    keys = jax.random.split(key, 8)

    # inputs
    x = jax.random.normal(keys[0], (N, input_dim), jnp.float32)
    adj_raw = jax.random.uniform(keys[1], (N, N), jnp.float32)
    adj = 0.5 * (adj_raw + adj_raw.T)                             # positive, symmetric
    batch = jnp.repeat(jnp.arange(num_graphs), N // num_graphs)   # node -> graph id

    # parameters (deterministic synthetic init)
    conv_layers = []
    dims = [input_dim] + [hidden_dim] * num_layers
    for i in range(num_layers):
        w = xavier_uniform(keys[2 + i], (dims[i], dims[i + 1]))
        b = jnp.zeros((1, dims[i + 1]), jnp.float32)
        conv_layers.append((w, b))
    fc_w = xavier_uniform(keys[6], (hidden_dim, output_dim))      # stored as W.T
    fc_b = jnp.zeros((1, output_dim), jnp.float32)
    # scalar params: p, q, r, c1, c2, c3, d1
    scalars = jnp.array([0.3, -0.5, -0.5, 0.1, 1.0, 0.2, 1.0], jnp.float32)

    params = {"scalars": scalars, "conv_layers": conv_layers,
              "fc_w": fc_w, "fc_b": fc_b, "num_graphs": num_graphs}

    out = gcn_graph_classification_forward(x, adj, batch, params)
    out = jax.block_until_ready(out)
    assert out.shape == (num_graphs, output_dim)

    ref = reference_forward(x, adj, batch, params)
    err = float(jnp.max(jnp.abs(out - ref)))
    assert err < 5e-2, f"max abs err vs reference: {err}"

    print("KERNEL_OK")
</pallas_src>

<mosaic_0001>
module attributes {stable_mosaic.version = 11 : i64} {
  func.func @kernel(%arg0: i32, %arg1: memref<7xf32, #tpu.memory_space<smem>>, %arg2: memref<16x16xbf16, #tpu.memory_space<any>>, %arg3: memref<16x128xbf16, #tpu.memory_space<any>>, %arg4: memref<16x1xf32, #tpu.memory_space<vmem>>, %arg5: memref<16x1xf32, #tpu.memory_space<vmem>>, %arg6: memref<1x16xf32, #tpu.memory_space<vmem>>, %arg7: memref<1x128x128xbf16, #tpu.memory_space<vmem>>, %arg8: memref<1x1x128xf32, #tpu.memory_space<vmem>>, %arg9: memref<2x16xbf16, #tpu.memory_space<vmem>>, %arg10: memref<128x128xbf16, #tpu.memory_space<vmem>>, %arg11: memref<1x128xf32, #tpu.memory_space<vmem>>, %arg12: memref<2x128xf32, #tpu.memory_space<vmem>>, %arg13: memref<16x16xbf16, #tpu.memory_space<vmem>>, %arg14: memref<16x128xbf16, #tpu.memory_space<vmem>>, %arg15: memref<2x!tpu.dma_semaphore, #tpu.memory_space<semaphore_mem>>) attributes {dimension_semantics = [#tpu.dimension_semantics<arbitrary>], iteration_bounds = array<i64: 2>, scalar_prefetch = 0 : i64, scratch_operands = 3 : i64, tpu.core_type = #tpu.core_type<tc>, window_params = [{transform_indices = @transform_0, window_bounds = array<i64: 7>}, {}, {}, {pipeline_mode = #tpu.pipeline_mode<synchronous>, transform_indices = @transform_3, window_bounds = array<i64: 16, 1>}, {pipeline_mode = #tpu.pipeline_mode<synchronous>, transform_indices = @transform_4, window_bounds = array<i64: 16, 1>}, {pipeline_mode = #tpu.pipeline_mode<synchronous>, transform_indices = @transform_5, window_bounds = array<i64: 1, 16>}, {transform_indices = @transform_6, window_bounds = array<i64: 1, 128, 128>}, {transform_indices = @transform_7, window_bounds = array<i64: 1, 1, 128>}, {pipeline_mode = #tpu.pipeline_mode<synchronous>, transform_indices = @transform_8, window_bounds = array<i64: 2, 16>}, {pipeline_mode = #tpu.pipeline_mode<synchronous>, transform_indices = @transform_9, window_bounds = array<i64: 128, 128>}, {pipeline_mode = #tpu.pipeline_mode<synchronous>, transform_indices = @transform_10, window_bounds = array<i64: 1, 128>}, {pipeline_mode = #tpu.pipeline_mode<synchronous>, transform_indices = @transform_11, window_bounds = array<i64: 2, 128>}]} {
    %c0_i32 = arith.constant 0 : i32
    %0 = arith.cmpi eq, %arg0, %c0_i32 : i32
    %1 = arith.extui %0 : i1 to i32
    %c0_i32_0 = arith.constant 0 : i32
    %2 = arith.cmpi ne, %1, %c0_i32_0 : i32
    scf.if %2 {
      %c0_i32_15 = arith.constant 0 : i32
      %21 = tpu.memref_slice %arg15[%c0_i32_15] : memref<2x!tpu.dma_semaphore, #tpu.memory_space<semaphore_mem>> -> memref<1x!tpu.dma_semaphore, #tpu.memory_space<semaphore_mem>>
      %22 = tpu.memref_squeeze %21 : memref<1x!tpu.dma_semaphore, #tpu.memory_space<semaphore_mem>> -> memref<!tpu.dma_semaphore, #tpu.memory_space<semaphore_mem>>
      tpu.enqueue_dma source(%arg2 : memref<16x16xbf16, #tpu.memory_space<any>>) target(%arg13 : memref<16x16xbf16, #tpu.memory_space<vmem>>) target_semaphore(%22 : memref<!tpu.dma_semaphore, #tpu.memory_space<semaphore_mem>>)
      %c1_i32_16 = arith.constant 1 : i32
      %23 = tpu.memref_slice %arg15[%c1_i32_16] : memref<2x!tpu.dma_semaphore, #tpu.memory_space<semaphore_mem>> -> memref<1x!tpu.dma_semaphore, #tpu.memory_space<semaphore_mem>>
      %24 = tpu.memref_squeeze %23 : memref<1x!tpu.dma_semaphore, #tpu.memory_space<semaphore_mem>> -> memref<!tpu.dma_semaphore, #tpu.memory_space<semaphore_mem>>
      tpu.enqueue_dma source(%arg3 : memref<16x128xbf16, #tpu.memory_space<any>>) target(%arg14 : memref<16x128xbf16, #tpu.memory_space<vmem>>) target_semaphore(%24 : memref<!tpu.dma_semaphore, #tpu.memory_space<semaphore_mem>>)
      %c0_i32_17 = arith.constant 0 : i32
      %25 = tpu.memref_slice %arg15[%c0_i32_17] : memref<2x!tpu.dma_semaphore, #tpu.memory_space<semaphore_mem>> -> memref<1x!tpu.dma_semaphore, #tpu.memory_space<semaphore_mem>>
      %26 = tpu.memref_squeeze %25 : memref<1x!tpu.dma_semaphore, #tpu.memory_space<semaphore_mem>> -> memref<!tpu.dma_semaphore, #tpu.memory_space<semaphore_mem>>
      tpu.wait_dma2 semaphore(%26 : memref<!tpu.dma_semaphore, #tpu.memory_space<semaphore_mem>>) src(%arg2 : memref<16x16xbf16, #tpu.memory_space<any>>) dst(%arg13 : memref<16x16xbf16, #tpu.memory_space<vmem>>)
      %c1_i32_18 = arith.constant 1 : i32
      %27 = tpu.memref_slice %arg15[%c1_i32_18] : memref<2x!tpu.dma_semaphore, #tpu.memory_space<semaphore_mem>> -> memref<1x!tpu.dma_semaphore, #tpu.memory_space<semaphore_mem>>
      %28 = tpu.memref_squeeze %27 : memref<1x!tpu.dma_semaphore, #tpu.memory_space<semaphore_mem>> -> memref<!tpu.dma_semaphore, #tpu.memory_space<semaphore_mem>>
      tpu.wait_dma2 semaphore(%28 : memref<!tpu.dma_semaphore, #tpu.memory_space<semaphore_mem>>) src(%arg3 : memref<16x128xbf16, #tpu.memory_space<any>>) dst(%arg14 : memref<16x128xbf16, #tpu.memory_space<vmem>>)
      %c3 = arith.constant 3 : index
      %29 = memref.load %arg1[%c3] : memref<7xf32, #tpu.memory_space<smem>>
      %c4 = arith.constant 4 : index
      %30 = memref.load %arg1[%c4] : memref<7xf32, #tpu.memory_space<smem>>
      %c5 = arith.constant 5 : index
      %31 = memref.load %arg1[%c5] : memref<7xf32, #tpu.memory_space<smem>>
      %c6 = arith.constant 6 : index
      %32 = memref.load %arg1[%c6] : memref<7xf32, #tpu.memory_space<smem>>
      %33 = tpu.iota {dimensions = array<i32: 0>} : vector<16x16xi32>
      %34 = tpu.iota {dimensions = array<i32: 1>} : vector<16x16xi32>
      %35 = arith.cmpi eq, %33, %34 : vector<16x16xi32>
      %c0_19 = arith.constant 0 : index
      %c0_20 = arith.constant 0 : index
      %36 = vector.load %arg13[%c0_19, %c0_20] : memref<16x16xbf16, #tpu.memory_space<vmem>>, vector<16x16xbf16>
      %37 = arith.extf %36 : vector<16x16xbf16> to vector<16x16xf32>
      %38 = vector.broadcast %32 : f32 to vector<16x16xf32>
      %39 = arith.addf %37, %38 : vector<16x16xf32>
      %40 = arith.select %35, %39, %37 : vector<16x16xi1>, vector<16x16xf32>
      %cst_21 = arith.constant 0.000000e+00 : f32
      %41 = arith.subf %cst_21, %30 : f32
      %c0_22 = arith.constant 0 : index
      %c0_23 = arith.constant 0 : index
      %42 = vector.load %arg5[%c0_22, %c0_23] : memref<16x1xf32, #tpu.memory_space<vmem>>, vector<16x1xf32>
      %43 = vector.broadcast %42 : vector<16x1xf32> to vector<16x16xf32>
      %44 = arith.mulf %43, %40 : vector<16x16xf32>
      %c0_24 = arith.constant 0 : index
      %c0_25 = arith.constant 0 : index
      %45 = vector.load %arg6[%c0_24, %c0_25] : memref<1x16xf32, #tpu.memory_space<vmem>>, vector<1x16xf32>
      %46 = vector.broadcast %45 : vector<1x16xf32> to vector<16x16xf32>
      %47 = arith.mulf %44, %46 : vector<16x16xf32>
      %48 = vector.broadcast %41 : f32 to vector<16x16xf32>
      %49 = arith.mulf %48, %47 : vector<16x16xf32>
      %c0_26 = arith.constant 0 : index
      %c0_27 = arith.constant 0 : index
      %50 = vector.load %arg4[%c0_26, %c0_27] : memref<16x1xf32, #tpu.memory_space<vmem>>, vector<16x1xf32>
      %51 = vector.broadcast %31 : f32 to vector<16x1xf32>
      %52 = arith.mulf %51, %50 : vector<16x1xf32>
      %53 = vector.broadcast %52 : vector<16x1xf32> to vector<16x16xf32>
      %54 = arith.addf %49, %53 : vector<16x16xf32>
      %55 = vector.broadcast %29 : f32 to vector<16x16xf32>
      %56 = arith.addf %54, %55 : vector<16x16xf32>
      %57 = arith.select %35, %56, %49 : vector<16x16xi1>, vector<16x16xf32>
      %58 = arith.truncf %57 : vector<16x16xf32> to vector<16x16xbf16>
      %c0_28 = arith.constant 0 : index
      %c0_29 = arith.constant 0 : index
      %59 = vector.load %arg13[%c0_28, %c0_29] : memref<16x16xbf16, #tpu.memory_space<vmem>>, vector<16x16xbf16>
      tpu.vector_store %arg13[%c0_28, %c0_29], %58 {strides = array<i32>} : memref<16x16xbf16, #tpu.memory_space<vmem>>, vector<16x16xbf16>,
    } else {
    }
    %c0 = arith.constant 0 : index
    %c0_1 = arith.constant 0 : index
    %c0_2 = arith.constant 0 : index
    %3 = vector.load %arg7[%c0, %c0_1, %c0_2] : memref<1x128x128xbf16, #tpu.memory_space<vmem>>, vector<1x128x128xbf16>
    %4 = vector.shape_cast %3 : vector<1x128x128xbf16> to vector<128x128xbf16>
    %c0_3 = arith.constant 0 : index
    %c0_4 = arith.constant 0 : index
    %c0_5 = arith.constant 0 : index
    %5 = vector.load %arg8[%c0_3, %c0_4, %c0_5] : memref<1x1x128xf32, #tpu.memory_space<vmem>>, vector<1x1x128xf32>
    %6 = vector.shape_cast %5 : vector<1x1x128xf32> to vector<1x128xf32>
    %c0_6 = arith.constant 0 : index
    %c0_7 = arith.constant 0 : index
    %7 = vector.load %arg14[%c0_6, %c0_7] : memref<16x128xbf16, #tpu.memory_space<vmem>>, vector<16x128xbf16>
    %cst = arith.constant dense<0.000000e+00> : vector<16x128xf32>
    %8 = tpu.matmul %7, %4, %cst {dimension_numbers = #tpu.dot_dimension_numbers<[1], [0], [0], [1], [0, 0, 1, 1], [], []>} : vector<16x128xbf16>, vector<128x128xbf16>, vector<16x128xf32> -> vector<16x128xf32>
    %c0_8 = arith.constant 0 : index
    %c0_9 = arith.constant 0 : index
    %9 = vector.load %arg13[%c0_8, %c0_9] : memref<16x16xbf16, #tpu.memory_space<vmem>>, vector<16x16xbf16>
    %10 = arith.truncf %8 : vector<16x128xf32> to vector<16x128xbf16>
    %cst_10 = arith.constant dense<0.000000e+00> : vector<16x128xf32>
    %11 = tpu.matmul %9, %10, %cst_10 {dimension_numbers = #tpu.dot_dimension_numbers<[1], [0], [0], [1], [0, 0, 1, 1], [], []>} : vector<16x16xbf16>, vector<16x128xbf16>, vector<16x128xf32> -> vector<16x128xf32>
    %12 = vector.broadcast %6 : vector<1x128xf32> to vector<16x128xf32>
    %13 = arith.addf %11, %12 : vector<16x128xf32>
    %cst_11 = arith.constant 0.000000e+00 : f32
    %14 = vector.broadcast %cst_11 : f32 to vector<16x128xf32>
    %15 = arith.maximumf %13, %14 : vector<16x128xf32>
    %16 = arith.truncf %15 : vector<16x128xf32> to vector<16x128xbf16>
    %c0_12 = arith.constant 0 : index
    %c0_13 = arith.constant 0 : index
    %17 = vector.load %arg14[%c0_12, %c0_13] : memref<16x128xbf16, #tpu.memory_space<vmem>>, vector<16x128xbf16>
    tpu.vector_store %arg14[%c0_12, %c0_13], %16 {strides = array<i32>} : memref<16x128xbf16, #tpu.memory_space<vmem>>, vector<16x128xbf16>,
    %c1_i32 = arith.constant 1 : i32
    %18 = arith.cmpi eq, %arg0, %c1_i32 : i32
    %19 = arith.extui %18 : i1 to i32
    %c0_i32_14 = arith.constant 0 : i32
    %20 = arith.cmpi ne, %19, %c0_i32_14 : i32
    scf.if %20 {
      %c0_15 = arith.constant 0 : index
      %c0_16 = arith.constant 0 : index
      %21 = vector.load %arg9[%c0_15, %c0_16] : memref<2x16xbf16, #tpu.memory_space<vmem>>, vector<2x16xbf16>
      %c0_17 = arith.constant 0 : index
      %c0_18 = arith.constant 0 : index
      %22 = vector.load %arg14[%c0_17, %c0_18] : memref<16x128xbf16, #tpu.memory_space<vmem>>, vector<16x128xbf16>
      %cst_19 = arith.constant dense<0.000000e+00> : vector<2x128xf32>
      %23 = tpu.matmul %21, %22, %cst_19 {dimension_numbers = #tpu.dot_dimension_numbers<[1], [0], [0], [1], [0, 0, 1, 1], [], []>} : vector<2x16xbf16>, vector<16x128xbf16>, vector<2x128xf32> -> vector<2x128xf32>
      %24 = arith.truncf %23 : vector<2x128xf32> to vector<2x128xbf16>
      %c0_20 = arith.constant 0 : index
      %c0_21 = arith.constant 0 : index
      %25 = vector.load %arg10[%c0_20, %c0_21] : memref<128x128xbf16, #tpu.memory_space<vmem>>, vector<128x128xbf16>
      %cst_22 = arith.constant dense<0.000000e+00> : vector<2x128xf32>
      %26 = tpu.matmul %24, %25, %cst_22 {dimension_numbers = #tpu.dot_dimension_numbers<[1], [0], [0], [1], [0, 0, 1, 1], [], []>} : vector<2x128xbf16>, vector<128x128xbf16>, vector<2x128xf32> -> vector<2x128xf32>
      %c0_23 = arith.constant 0 : index
      %c0_24 = arith.constant 0 : index
      %27 = vector.load %arg11[%c0_23, %c0_24] : memref<1x128xf32, #tpu.memory_space<vmem>>, vector<1x128xf32>
      %28 = vector.broadcast %27 : vector<1x128xf32> to vector<2x128xf32>
      %29 = arith.addf %26, %28 : vector<2x128xf32>
      %30 = tpu.iota {dimensions = array<i32: 1>} : vector<2x128xi32>
      %c4_i32 = arith.constant 4 : i32
      %31 = vector.broadcast %c4_i32 : i32 to vector<2x128xi32>
      %32 = arith.cmpi slt, %30, %31 : vector<2x128xi32>
      %cst_25 = arith.constant -1.000000e+30 : f32
      %33 = vector.broadcast %cst_25 : f32 to vector<2x128xf32>
      %34 = arith.select %32, %29, %33 : vector<2x128xi1>, vector<2x128xf32>
      %cst_26 = arith.constant dense<0xFF800000> : vector<2xf32>
      %35 = vector.multi_reduction <maximumf>, %34, %cst_26 [1] : vector<2x128xf32> to vector<2xf32>
      %36 = vector.shape_cast %35 : vector<2xf32> to vector<2x1xf32>
      %37 = vector.broadcast %36 : vector<2x1xf32> to vector<2x128xf32>
      %38 = arith.subf %34, %37 : vector<2x128xf32>
      %39 = math.exp %38 : vector<2x128xf32>
      %cst_27 = arith.constant dense<0.000000e+00> : vector<2xf32>
      %40 = vector.multi_reduction <add>, %39, %cst_27 [1] : vector<2x128xf32> to vector<2xf32>
      %41 = vector.shape_cast %40 : vector<2xf32> to vector<2x1xf32>
      %42 = math.log %41 : vector<2x1xf32>
      %43 = vector.broadcast %42 : vector<2x1xf32> to vector<2x128xf32>
      %44 = arith.subf %38, %43 : vector<2x128xf32>
      %c0_28 = arith.constant 0 : index
      %c0_29 = arith.constant 0 : index
      %45 = vector.load %arg12[%c0_28, %c0_29] : memref<2x128xf32, #tpu.memory_space<vmem>>, vector<2x128xf32>
      tpu.vector_store %arg12[%c0_28, %c0_29], %44 {strides = array<i32>} : memref<2x128xf32, #tpu.memory_space<vmem>>, vector<2x128xf32>,
    } else {
    }
    return
  }
  func.func @transform_0(%arg0: i32) -> i32 {
    %c0_i32 = arith.constant 0 : i32
    %c0_i32_0 = arith.constant 0 : i32
    return %c0_i32 : i32
  }
  func.func @transform_3(%arg0: i32) -> (i32, i32) {
    %c0_i32 = arith.constant 0 : i32
    %c0_i32_0 = arith.constant 0 : i32
    %c0_i32_1 = arith.constant 0 : i32
    return %c0_i32, %c0_i32_0 : i32, i32
  }
  func.func @transform_4(%arg0: i32) -> (i32, i32) {
    %c0_i32 = arith.constant 0 : i32
    %c0_i32_0 = arith.constant 0 : i32
    %c0_i32_1 = arith.constant 0 : i32
    return %c0_i32, %c0_i32_0 : i32, i32
  }
  func.func @transform_5(%arg0: i32) -> (i32, i32) {
    %c0_i32 = arith.constant 0 : i32
    %c0_i32_0 = arith.constant 0 : i32
    %c0_i32_1 = arith.constant 0 : i32
    return %c0_i32, %c0_i32_0 : i32, i32
  }
  func.func @transform_6(%arg0: i32) -> (i32, i32, i32) {
    %c0_i32 = arith.constant 0 : i32
    %c0_i32_0 = arith.constant 0 : i32
    %c0_i32_1 = arith.constant 0 : i32
    return %arg0, %c0_i32, %c0_i32_0 : i32, i32, i32
  }
  func.func @transform_7(%arg0: i32) -> (i32, i32, i32) {
    %c0_i32 = arith.constant 0 : i32
    %c0_i32_0 = arith.constant 0 : i32
    %c0_i32_1 = arith.constant 0 : i32
    return %arg0, %c0_i32, %c0_i32_0 : i32, i32, i32
  }
  func.func @transform_8(%arg0: i32) -> (i32, i32) {
    %c0_i32 = arith.constant 0 : i32
    %c0_i32_0 = arith.constant 0 : i32
    %c0_i32_1 = arith.constant 0 : i32
    return %c0_i32, %c0_i32_0 : i32, i32
  }
  func.func @transform_9(%arg0: i32) -> (i32, i32) {
    %c0_i32 = arith.constant 0 : i32
    %c0_i32_0 = arith.constant 0 : i32
    %c0_i32_1 = arith.constant 0 : i32
    return %c0_i32, %c0_i32_0 : i32, i32
  }
  func.func @transform_10(%arg0: i32) -> (i32, i32) {
    %c0_i32 = arith.constant 0 : i32
    %c0_i32_0 = arith.constant 0 : i32
    %c0_i32_1 = arith.constant 0 : i32
    return %c0_i32, %c0_i32_0 : i32, i32
  }
  func.func @transform_11(%arg0: i32) -> (i32, i32) {
    %c0_i32 = arith.constant 0 : i32
    %c0_i32_0 = arith.constant 0 : i32
    %c0_i32_1 = arith.constant 0 : i32
    return %c0_i32, %c0_i32_0 : i32, i32
  }
}

</mosaic_0001>

<bundles_post_ra>
// kernel: tpu_custom_call.1
= control target key start
LH: loop header
LB: loop body
LE: loop exit
PB: predicated region body
PF: predicated region fallthrough
CT: control target
= control target key end

     0   :  { %s1513_s0 = inlined_call_operand.vmem [shape: f32[7], index: 0, kind: input, shape index: {}]   ;;  %s1514_s1 = inlined_call_operand.vmem [shape: bf16[16,16], index: 1, kind: input, shape index: {}]   ;;  %s1515_s2 = inlined_call_operand.vmem [shape: bf16[16,128], index: 2, kind: input, shape index: {}]   ;;  %s1516_s3 = inlined_call_operand.vmem [shape: f32[16,1], index: 3, kind: input, shape index: {}]   ;;  %s1517_s4 = inlined_call_operand.vmem [shape: f32[16,1], index: 4, kind: input, shape index: {}]   ;;  %s1518_s5 = inlined_call_operand.vmem [shape: f32[1,16], index: 5, kind: input, shape index: {}]   ;;  %s1519_s6 = inlined_call_operand.hbm [shape: bf16[2,128,128], index: 6, kind: input, shape index: {}]   ;;  %s1520_s7 = inlined_call_operand.vmem [shape: f32[2,1,128], index: 7, kind: input, shape index: {}]   ;;  %s1521_s8 = inlined_call_operand.vmem [shape: bf16[2,16], index: 8, kind: input, shape index: {}]   ;;  %s1522_s9 = inlined_call_operand.hbm [shape: bf16[128,128], index: 9, kind: input, shape index: {}]   ;;  %s1523_s10 = inlined_call_operand.vmem [shape: f32[1,128], index: 10, kind: input, shape index: {}]   ;;  %s1524_s11 = inlined_call_operand.hbm [shape: f32[2,128], index: 11, kind: output, shape index: {}]  }
   0x1   :  { %1527 = sst [smem:[#allocation23_spill]] %s1513_s0 }
   0x2   :  { %1528 = sst [smem:[#allocation24_spill]] %s1522_s9 }
   0x3   :  { %1529 = sst [smem:[#allocation25_spill]] %s1523_s10 }
   0x4   :  { %1530 = sst [smem:[#allocation26_spill]] %s1524_s11 }
   0x5   :  { %16 = vsyncpa [#allocation8], 0 }
   0x6   :  { %17 = vsyncpa [#allocation6], 0 }
   0x7   :  { %19 = vsyncpa [#allocation6 + $0x1], 0 }
   0x8   :  { %20 = vsyncpa [#allocation11], 0 }
   0x9   :  { %21 = vsyncpa [#allocation7], 0  ;;  %s1332_s17 = smov 0   ;;  %s1334_s18 = smov 0  }
   0xa   :  { %s1336_s19 = smov 0   ;;  %s1338_s20 = smov 0  }
   0xb LB: > { %s1351_s21 = sadd.s32 4294967295, %s1264_s20   ;;  %s1354_s22 = sadd.s32 1, %s1264_s20   ;;  %s1264_s20 = sphi %s1338_s20, %s1541_s20   ;;  %s1260_s19 = sphi %s1336_s19, %s1545_s19   ;;  %s1256_s18 = sphi %s1334_s18, %s1544_s18   ;;  %s1252_s17 = sphi %s1332_s17, %s1543_s17  }
   0xc   : > { %1531 = sst [smem:[#allocation21_spill]] %s1354_s22  ;;  %s115_s23 = ssub.s32 %s1264_s20, %s1354_s22 }
   0xd   : > { %s118_s24 = sadd.s32 1, %s1260_s19  ;;  %p116_p0 = scmp.eq.s32.totalorder %s115_s23, 0 }
   0xe   : > { %p125_p1 = scmp.ne.s32.totalorder %s1260_s19, %s1256_s18  ;;  %p126_p2 = scmp.eq.s32.totalorder %s1264_s20, 0 }
   0xf   : > { %p131_p3 = scmp.ne.s32.totalorder %s1256_s18, %s1252_s17  ;;  %p132_p5 = scmp.eq.s32.totalorder %s1351_s21, 0 }
  0x10   : > { %s1364_s25 = scalar_select %p116_p0, %s1260_s19, %s118_s24  }
  0x11   : > { %p1366_p4 = por %p126_p2, %p125_p1  ;;  %p902_p6 = scmp.ge.s32.totalorder %s1264_s20, 1 }
  0x12   : > { %1532 = sst [smem:[#allocation22_spill]] %s1364_s25  ;;  %p252_p7 = scmp.lt.s32.totalorder %s1264_s20, 3 }
  0x13   : > { %p1375_p8 = por %p132_p5, %p131_p3  ;;  %p903_p9 = scmp.ne.s32.totalorder %s1351_s21, 0 }
  0x14   : > { %p1380_p10 = pnand %p902_p6, %p252_p7  ;;  %s1536_s0 = sld [smem:[#allocation23_spill]] }
  0x15   : > { %p1059_p12 = scmp.lt.s32.totalorder %s1264_s20, 2  ;;  %s1537_s9 = sld [smem:[#allocation24_spill]] }
  0x16   : > { %p1046_p11 = pneg %p1380_p10  ;;  %s1266_s17 = smov [#allocation10]  }
  0x17   : > { %p1397_p0 = pnand %p1059_p12, %p1366_p4  ;;  %s287_s23 = sshll.u32 %s1266_s17, 4  ;;  %s288_s23 = int_to_ptr.vmem [resolvable:$true] %s287_s23 }
  0x18   : > { %p1047_p13 = pnand %p1046_p11, %p132_p5  ;;  %s1267_s24 = smov [#allocation5]  }
  0x19   : > { %s1268_s29 = smov 64   ;;  %s1269_s30 = smov 4  }
  0x1a   : > { %s264_s12 = sshll.u32 %s1536_s0, 4  ;;  %s304_s13 = sand.u32 1, %s1260_s19   ;;  %s265_s12 = int_to_ptr.vmem [resolvable:$true] %s264_s12 }
  0x1b   : > { %s285_s15 = sshll.u32 %s1537_s9, 4  ;;  %s1003_s14 = sshll.u32 %s1264_s20, 6  ;;  %s286_s15 = int_to_ptr.hbm [resolvable:$true] %s285_s15 }
  0x1c   : > { %1049 = dma.vmem_to_smem (!%p1047_p13), %s265_s12, 16, %s1267_s24, [#allocation8]  }
  0x1d   : > { %1052 = dma.hbm_to_vmem [thread:$0]  (!%p1047_p13), %s286_s15, 1024, %s288_s23, [#allocation11], %s1268_s29, %s1268_s29, %s1269_s30  }
  0x1e   : > { %s906_s0 = sshll.u32 %s304_s13, 6  ;;  %s313_s25 = scalar_lea.hbm %s1519_s6, %s1003_s14 }
  0x1f   : > { %s314_s22 = sshll.u32 %s313_s25, 4  ;;  %s308_s11 = scalar_lea.vmem [#allocation9], %s906_s0  ;;  %s315_s22 = int_to_ptr.hbm [resolvable:$true] %s314_s22 }
  0x20   : > { %s316_s17 = sshll.u32 %s308_s11, 4  ;;  %s305_s12 = scalar_lea.sflag [#allocation6], %s304_s13  ;;  %s317_s17 = int_to_ptr.vmem [resolvable:$true] %s316_s17 }
  0x21   : > { %s1156_s24 = sshra.s32 %s315_s22, 4  ;;  %p1160_p2 = pneg %p1397_p0  ;;  %s1157_s24 = int_to_ptr.hbm [resolvable:$true] %s1156_s24 }
  0x22   : > { %s1158_s10 = scalar_lea.hbm %s1157_s24, 64  ;;  %s1163_s23 = scalar_lea.hbm %s1519_s6, 128 }
  0x23   : > { %p1159_p1 = scmp.ne.s32.totalorder %s1157_s24, %s1158_s10  ;;  %p1164_p6 = scmp.lt.s32.totalorder %s1157_s24, %s1519_s6 }
  0x24   : > { %p1165_p7 = scmp.lt.s32.totalorder %s1163_s23, %s1158_s10 }
  0x25   : > { %p1161_p3 = pnand %p1160_p2, %p1159_p1 }
  0x26   : > { %p1166_p11 = por %p1165_p7, %p1164_p6 }
  0x27   : > { %p1162_p4 = pneg %p1161_p3 }
  0x29   : > { %p1167_p12 = pnand %p1166_p11, %p1162_p4 }
  0x2b   : > { %1170 = shalt.err (!%p1167_p12)
}
  0x2c   : > { %1056 = dma.hbm_to_vmem [thread:$0]  (!%p1397_p0), %s315_s22, 1024, %s317_s17, %s305_s12, %s1268_s29, %s1268_s29, %s1269_s30  }
  0x2d   : > { %334 = sbr.rel (%p1380_p10) target bundleno = 1059 (0x423), region = 56 }
  0x32   : > { %1231 = dma.done.wait (%p132_p5), [#allocation8], 16  }
  0x33   : > { %1233 = vsyncadd (%p132_p5), [#allocation8], 4294967280  ;;  %s341_s0 = sand.u32 1, %s1256_s18  }
  0x34   : > { %s911_s10 = sshll.u32 %s341_s0, 6  ;;  %s342_s11 = scalar_lea.sflag [#allocation6], %s341_s0 }
  0x35   : > { %s1429_s25 = scalar_lea.vmem [#allocation9], %s911_s10 }
  0x36   : > { %1235 = dma.done.wait (%p1375_p8), %s342_s11, 1024  }
  0x37   : > { %1237 = vsyncadd (%p1375_p8), %s342_s11, 4294966272 }
  0x38   : > { %1239 = dma.done.wait (%p132_p5), [#allocation11], 1024  }
  0x39   : > { %1241 = vsyncadd (%p132_p5), [#allocation11], 4294966272 }
  0x3a   : > { %356 = sfence }
  0x3b   : > { %p385_p10 = scmp.lt.s32.totalorder %s1351_s21, 1  ;;  %392 = sbr.rel (%p903_p9) target bundleno = 212 (0xd4), region = 72 }
  0x3d   : > { %s1441_s22 = scalar_select %p385_p10, %s1351_s21, 1 }
  0x3f   : > { %s387_s29 = scalar_lea.vmem %s1520_s7, %s1441_s22 }
  0x40   : > { %v419_v0 = vld [vmem:[%s1514_s1] sm:$0xff] }
  0x41   : > { %420 = vst [vmem:[#allocation2] sm:$0xff] %v419_v0 }
  0x42   : > { %426 = vsyncadd [#allocation4], 128  ;;  %v454_v1 = vld [vmem:[%s1515_s2] sm:$0xff] }
  0x43   : > { %455 = vst [vmem:[#allocation3] sm:$0xff] %v454_v1 }
  0x44   : > { %461 = vsyncadd [#allocation4 + $0x1], 128 }
  0x45   : > { %1242 = dma.done.wait [#allocation4], 128 }
  0x46   : > { %1243 = vsyncadd [#allocation4], 4294967168 }
  0x47   : > { %1244 = dma.done.wait [#allocation4 + $0x1], 128 }
  0x48   : > { %1245 = vsyncadd [#allocation4 + $0x1], 4294967168  ;;  %v1270_v2 = vmov 0   ;;  %s916_s17 = sld [smem:[#allocation5 + $0x5]]  ;;  %v489_v3 = vld [vmem:[%s1517_s4] sm:$0xff]  ;;  %v513_v7 = vld [vmem:[%s1516_s3 + $0x8] sm:$0xff]  ;;  %v472_v10 = vlaneseq }
  0x49   : > { %1102 = vset.pattern.permute.xlu0 %v1270_v2  ;;  %1103 = vset.pattern.permute.xlu1 %v1270_v2  ;;  %v512_v4 = vld [vmem:[%s1516_s3] sm:$0xff]  ;;  %v490_v8 = vld [vmem:[%s1517_s4 + $0x8] sm:$0xff]  ;;  %s917_s10 = sld [smem:[#allocation5 + $0x6]]  ;;  %vm536_vm2 = vcmask 125952  }
  0x4a   : > { %493 = vperm.xlu0 %1102, %v489_v3   ;;  %v1024_v11 = vld [vmem:[#allocation2] sm:$0xff]   ;;  %s915_s11 = sld [smem:[#allocation5 + $0x4]]  ;;  %v473_v13 = vshrl.u32 %v472_v10, 7  ;;  %v476_v14 = vand.u32 127, %v472_v10 }
  0x4b   : > { %v1025_v12 = vunpack.c.l.bf16 %v1024_v11  ;;  %s914_s28 = sld [smem:[#allocation5 + $0x3]]  ;;  %v1026_v18 = vunpack.c.h.bf16 %v1024_v11  ;;  %v1104_v19 = vld [vmem:[%s1518_s5] ss:$0 sm:$0xff] }
  0x4c   : > { %vm477_vm0 = vcmp.eq.s32.totalorder %v473_v13, %v476_v14  ;;  %v474_v20 = vadd.s32 8, %v473_v13 }
  0x4e   : > { %v514_v5 = vstv %s916_s17  ;;  %vm478_vm1 = vcmp.eq.s32.totalorder %v474_v20, %v476_v14 }
  0x4f   : > { %v515_v6 = vmul.f32 %v514_v5, %v512_v4  ;;  %v516_v9 = vmul.f32 %v514_v5, %v513_v7  ;;  %v483_v15 = vstv %s917_s10 }
  0x50   : > { %v484_v16 = vadd.f32 %v1025_v12, %v483_v15  ;;  %s488_s16 = ssub.f32 0.0, %s915_s11  ;;  %v485_v24 = vadd.f32 %v1026_v18, %v483_v15 }
  0x51   : > { %519 = vperm.xlu1 %1103, %v515_v6   ;;  %v529_v28 = vstv %s914_s28 }
  0x52   : > { %498 = vperm.xlu0 %1102, %v490_v8   ;;  %v486_v17 = vsel %vm477_vm0, %v484_v16, %v1025_v12  ;;  %v509_v23 = vstv %s488_s16  ;;  %v487_v29 = vsel %vm478_vm1, %v485_v24, %v1026_v18 }
  0x59   : > { %524 = vperm.xlu1 %1103, %v516_v9  }
  0xbc   : > { %v494_v21 = vpop.permute.xlu0 %493 }
  0xbd   : > { %v501_v22 = vmul.f32 %v494_v21, %v486_v17 }
  0xbf   : > { %v507_v25 = vmul.f32 %v1104_v19, %v501_v22 }
  0xc1   : > { %v510_v27 = vmul.f32 %v509_v23, %v507_v25 }
  0xc3   : > { %v520_v26 = vpop.permute.xlu1 %519 }
  0xc4   : > { %v527_v30 = vadd.f32 %v520_v26, %v510_v27  ;;  %v499_v31 = vpop.permute.xlu0 %498 }
  0xc5   : > { %v502_v33 = vmul.f32 %v499_v31, %v487_v29 }
  0xc6   : > { %v530_v32 = vadd.f32 %v529_v28, %v527_v30 }
  0xc7   : > { %v508_v35 = vmul.f32 %v1104_v19, %v502_v33 }
  0xc8   : > { %v532_v34 = vsel %vm477_vm0, %v530_v32, %v510_v27 }
  0xc9   : > { %v534_v36 = vpack.c.bf16 %v532_v34, %v532_v34  ;;  %v511_v37 = vmul.f32 %v509_v23, %v508_v35 }
  0xcb   : > { %537 = vst.msk [vmem:[#allocation2] sm:$0xf] %vm536_vm2, %v534_v36  ;;  %v525_v38 = vpop.permute.xlu1 %524 }
  0xcc   : > { %v528_v39 = vadd.f32 %v525_v38, %v511_v37 }
  0xce   : > { %v531_v40 = vadd.f32 %v529_v28, %v528_v39 }
  0xd0   : > { %v533_v41 = vsel %vm478_vm1, %v531_v40, %v511_v37 }
  0xd1   : > { %v535_v42 = vpack.c.bf16 %v533_v41, %v533_v41 }
  0xd3   : > { %538 = vst.msk [vmem:[#allocation2 + $0x4] sm:$0xf] %vm536_vm2, %v535_v42 }
  0xd4 PF: > { %v1011_v43 = vld [vmem:[%s1429_s25 + $0x38] sm:$0xff]  ;;  %v1010_v44 = vld [vmem:[%s1429_s25 + $0x30] sm:$0xff]  ;;  %v1009_v45 = vld [vmem:[%s1429_s25 + $0x28] sm:$0xff]  ;;  %vm637_vm3 = vcmask 130048   ;;  %p959_p5 = scmp.ne.s32.totalorder %s1351_s21, 1 }
  0xd5   : > { %612 = vmatpush.bf16.msra.mxu0 %v1011_v43  ;;  %v1008_v46 = vld [vmem:[%s1429_s25 + $0x20] sm:$0xff]  ;;  %v1007_v47 = vld [vmem:[%s1429_s25 + $0x18] sm:$0xff]  ;;  %v1006_v48 = vld [vmem:[%s1429_s25 + $0x10] sm:$0xff]  ;;  %s1539_s12 = sld [smem:[#allocation25_spill]] (!%p959_p5) }
  0xd6   : > { %v1005_v49 = vld [vmem:[%s1429_s25 + $0x8] sm:$0xff]  ;;  %v1004_v50 = vld [vmem:[%s1429_s25] sm:$0xff]  ;;  %v1012_v51 = vld [vmem:[#allocation3] sm:$0xff] }
  0xd7   : > { %v1105_v57 = vld [vmem:[%s387_s29] ss:$0 sm:$0xff] }
  0xd9   : > { %613 = vmatpush.bf16.msra.mxu0 %v1010_v44 }
  0xda   : > { %v1013_v55 = vld [vmem:[#allocation2] sm:$0xff] }
  0xdd   : > { %614 = vmatpush.bf16.msra.mxu0 %v1009_v45 }
  0xe1   : > { %615 = vmatpush.bf16.msra.mxu0 %v1008_v46 }
  0xe5   : > { %616 = vmatpush.bf16.msra.mxu0 %v1007_v47 }
  0xe9   : > { %617 = vmatpush.bf16.msra.mxu0 %v1006_v48 }
  0xed   : > { %618 = vmatpush.bf16.msra.mxu0 %v1005_v49 }
  0xf1   : > { %619 = vmatpush.bf16.msra.mxu0 %v1004_v50 }
  0xf4   : > { %620 = vmatmul.bf16.vlgmr.msra.gmra.mxu0 %v1012_v51 }
 0x171   : > { %v621_v52 = vpop.f32.mrf.mxu0 }
 0x179   : > { %v623_v53 = vpop.f32.mrf.mxu0 }
 0x17a   : > { %v628_v54 = vpack.c.bf16 %v623_v53, %v621_v52 }
 0x17c   : > { %648 = vmatpush.bf16.msra.mxu1 %v628_v54 }
 0x17f   : > { %958 = vmatmul.msk.bf16.vlgmr.msra.gmra.mxu1 %vm637_vm3, %v1013_v55 }
 0x1fc   : > { %v650_v56 = vpop.f32.mrf.mxu1 }
 0x1fd   : > { %v651_v58 = vadd.f32 %v1105_v57, %v650_v56 }
 0x1ff   : > { %v655_v61 = vmax.f32 %v651_v58, 0.0 }
 0x204   : > { %v652_v59 = vpop.f32.mrf.mxu1 }
 0x205   : > { %v653_v60 = vadd.f32 %v1105_v57, %v652_v59 }
 0x207   : > { %v656_v62 = vmax.f32 %v653_v60, 0.0  ;;  %664 = sbr.rel (%p959_p5) target bundleno = 1048 (0x418), region = 144 }
 0x209   : > { %v1030_v63 = vpack.c.bf16 %v656_v62, %v655_v61 }
 0x20b   : > { %1031 = vst [vmem:[#allocation3] sm:$0xff] %v1030_v63  }
 0x20c   : > { %v1022_v1 = vld [vmem:[#allocation10 + $0x38] sm:$0xff]  ;;  %v665_v2 = vld [vmem:[%s1521_s8] sm:$0x1]  ;;  %v1020_v4 = vld [vmem:[#allocation10 + $0x28] sm:$0xff]  ;;  %v772_v13 = vlaneseq  ;;  %vm776_vm5 = vcmask 1041408  }
 0x20d   : > { %759 = vmatpush.bf16.msra.mxu1 %v1022_v1  ;;  %v1021_v3 = vld [vmem:[#allocation10 + $0x30] sm:$0xff]  ;;  %v1019_v5 = vld [vmem:[#allocation10 + $0x20] sm:$0xff]  ;;  %v1018_v6 = vld [vmem:[#allocation10 + $0x18] sm:$0xff] }
 0x20e   : > { %v1017_v7 = vld [vmem:[#allocation10 + $0x10] sm:$0xff]  ;;  %v1016_v8 = vld [vmem:[#allocation10 + $0x8] sm:$0xff]  ;;  %v1015_v9 = vld [vmem:[#allocation10] sm:$0xff]  ;;  %v773_v14 = vand.u32 127, %v772_v13 }
 0x20f   : > { %v1106_v15 = vld [vmem:[%s1539_s12] ss:$0 sm:$0xff] }
 0x210   : > { %vm774_vm4 = vcmp.lt.s32.totalorder %v773_v14, 4 }
 0x211   : > { %760 = vmatpush.bf16.msra.mxu1 %v1021_v3 }
 0x212   : > { %v1014_v0 = vld [vmem:[#allocation3] sm:$0xff] }
 0x213   : > { %684 = vmatpush.bf16.msra.mxu0 %v1014_v0 }
 0x215   : > { %761 = vmatpush.bf16.msra.mxu1 %v1020_v4 }
 0x216   : > { %964 = vmatmul.msk.bf16.vlgmr.msra.gmra.mxu0 %vm637_vm3, %v665_v2 }
 0x219   : > { %762 = vmatpush.bf16.msra.mxu1 %v1019_v5 }
 0x21d   : > { %763 = vmatpush.bf16.msra.mxu1 %v1018_v6 }
 0x221   : > { %764 = vmatpush.bf16.msra.mxu1 %v1017_v7 }
 0x225   : > { %765 = vmatpush.bf16.msra.mxu1 %v1016_v8 }
 0x229   : > { %766 = vmatpush.bf16.msra.mxu1 %v1015_v9 }
 0x293   : > { %v686_v10 = vpop.f32.mrf.mxu0 }
 0x294   : > { %v690_v11 = vpack.c.bf16 %v686_v10, %v686_v10 }
 0x296   : > { %767 = vmatmul.bf16.vlgmr.msra.gmra.mxu1 %v690_v11 }
 0x29b   : > { %v688_v12 = vpop.f32.mrf.mxu0 }
 0x313   : > { %v768_v16 = vpop.f32.mrf.mxu1 }
 0x314   : > { %v769_v17 = vadd.f32 %v1106_v15, %v768_v16 }
 0x316   : > { %v775_v18 = vsel %vm774_vm4, %v769_v17, -1e+30 }
 0x317   : > { %v777_v19 = vsel %vm776_vm5, %v775_v18, -inf }
 0x318   : > { %778 = vmax.xlane.f32.xlu0 %v777_v19 }
 0x31b   : > { %v770_v20 = vpop.f32.mrf.mxu1 }
 0x38b   : > { %v779_v21 = vpop.xlane.xlu0 %778 }
 0x38c   : > { %v780_v22 = vsub.f32 %v775_v18, %v779_v21 }
 0x38e   : > { %v781_v23 = vmul.f32 1.442695, %v780_v22 }
 0x390   : > { %1107 = vpow2.f32 %v781_v23 }
 0x396   : > { %v1108_v24 = vpop.eup %1107 }
 0x397   : > { %v783_v25 = vsel %vm776_vm5, %v1108_v24, 0.0 }
 0x398   : > { %784 = vadd.xlane.f32.xlu0 %v783_v25 }
 0x40b   : > { %v785_v26 = vpop.xlane.xlu0 %784 }
 0x40c   : > { %1109 = vlog2.f32 %v785_v26 }
 0x412   : > { %v1110_v27 = vpop.eup %1109 }
 0x413   : > { %v787_v28 = vmul.f32 0.6931472, %v1110_v27 }
 0x415   : > { %v788_v29 = vsub.f32 %v780_v22, %v787_v28 }
 0x417   : > { %789 = vst [vmem:[#allocation12] sm:$0x3] %v788_v29 }
 0x418 PF: > { %p1062_p8 = scmp.eq.s32.totalorder %s1351_s21, 1  ;;  %s1271_s24 = smov [#allocation12]  }
 0x419   : > { %s796_s20 = sshll.u32 %s1271_s24, 4  ;;  %s1540_s9 = sld [smem:[#allocation26_spill]]  ;;  %s797_s20 = int_to_ptr.vmem [resolvable:$true] %s796_s20 }
 0x41f   : > { %s798_s14 = sshll.u32 %s1540_s9, 4  ;;  %s799_s14 = int_to_ptr.hbm [resolvable:$true] %s798_s14 }
 0x420   : > { %1043 = dma.vmem_to_hbm [thread:$0]  (%p1062_p8), %s797_s20, 32, %s799_s14, [#allocation7]  }
 0x421   : > { %1247 = dma.done.wait (%p1062_p8), [#allocation7], 32  }
 0x422   : > { %1249 = vsyncadd (%p1062_p8), [#allocation7], 4294967264 }
 0x423 PF: > { %s1541_s20 = sld [smem:[#allocation21_spill]]  ;;  %s1543_s17 = smov %s1256_s18 }
 0x424   : > { %s1542_s0 = sld [smem:[#allocation22_spill]]  ;;  %s1544_s18 = smov %s1260_s19 }
 0x429   : > { %p24_p9 = scmp.ge.s32.totalorder %s1541_s20, 4  }
 0x42a   : > { %s1545_s19 = smov %s1542_s0 }
 0x42b   :  { %26 = sbr.rel (!%p24_p9) target bundleno = 11 (0xb), region = 191 }
 0x430   :  { %812 = vsyncpa [#allocation6], 1 }
 0x431   :  { %814 = vsyncpa [#allocation6 + $0x1], 1 }
 0x432   :  { %815 = vsyncpa [#allocation11], 1 }
 0x433   :  { %816 = vsyncpa [#allocation7], 1 }
 0x434   :  { %818 = vsyncpa [#allocation7 + $0x1], 1 }
 0x435   :  { %819 = vsyncpa [#allocation8], 1 }
 0x436   :  { %821 = vsyncpa [#allocation8 + $0x1], 1 }
 0x437   :  { %822 = vsyncmov [#allocation4] }
 0x43a   :  { %s823_s21 = vpop.sfrf %822 }
 0x43b   :  { %p1001_p13 = scmp.ne.s32.totalorder %s823_s21, 0 }
 0x43d   :  { %827 = shalt.err (%p1001_p13)  }
 0x43e   :  { %829 = vsyncmov [#allocation4 + $0x1] }
 0x441   :  { %s830_s10 = vpop.sfrf %829 }
 0x442   :  { %p1002_p0 = scmp.ne.s32.totalorder %s830_s10, 0 }
 0x444   :  { %834 = shalt.err (%p1002_p0)  }

</bundles_post_ra>
